<compile_context>
chip_gen: v5e
topology: v5e:2x2
jax: 0.10.0
libtpu: 0.0.40
codegen_flags: <defaults>
</compile_context>

<pallas_src>
import functools

import jax
import jax.numpy as jnp
from jax.experimental import pallas as pl
from jax.experimental.pallas import tpu as pltpu


# ---------------------------------------------------------------------------
# Kernels
# ---------------------------------------------------------------------------

def _ca_fused_kernel(x_ref, w1t_ref, b1_ref, w2t_ref, b2_ref, o_ref):
    """Single pass: pool + squeeze-excite + rescale on one (Bn, C, HW) block."""
    x = x_ref[...]                                              # (Bn, C, HW)

    # Global average pool over spatial; the 1/HW scale is folded into w1t by
    # the wrapper, so a plain f32-accumulated sum suffices here.
    pooled = jnp.sum(x.astype(jnp.float32), axis=-1)            # (Bn, C)

    # 1x1 conv C -> Cr (+bias), ReLU.  Lane-dense (Bn, C) @ (C, Cr).
    h = jnp.dot(pooled, w1t_ref[...], preferred_element_type=jnp.float32)
    h = jnp.maximum(h + b1_ref[...], 0.0)                       # (Bn, Cr)

    # 1x1 conv Cr -> C (+bias), Sigmoid.
    s = jnp.dot(h, w2t_ref[...], preferred_element_type=jnp.float32)
    s = jax.nn.sigmoid(s + b2_ref[...])                         # (Bn, C)

    # Channel-wise rescale (broadcast over spatial).  Multiply in x's dtype so
    # bf16 inputs don't materialize a full-block f32 temporary.
    o_ref[...] = (x * s.astype(x.dtype)[:, :, None]).astype(o_ref.dtype)


def _ca_pool_se_kernel(hw_total, hw_tile,
                       x_ref, w1t_ref, b1_ref, w2t_ref, b2_ref,
                       s_ref, acc_ref):
    """Two-pass path, pass 1: HW-tiled pooling + squeeze-excite -> scale."""
    hi = pl.program_id(1)

    @pl.when(hi == 0)
    def _():
        acc_ref[...] = jnp.zeros_like(acc_ref)

    xf = x_ref[...].astype(jnp.float32)                         # (Bn, C, Thw)
    if hw_total % hw_tile != 0:
        # Mask out-of-range lanes of the (padded) last spatial tile.
        lane = jax.lax.broadcasted_iota(jnp.int32, xf.shape, 2)
        xf = jnp.where(hi * hw_tile + lane < hw_total, xf, 0.0)
    acc_ref[...] += jnp.sum(xf, axis=-1)                        # (Bn, C)

    @pl.when(hi == pl.num_programs(1) - 1)
    def _():
        pooled = acc_ref[...]                                   # (Bn, C)
        h = jnp.dot(pooled, w1t_ref[...], preferred_element_type=jnp.float32)
        h = jnp.maximum(h + b1_ref[...], 0.0)                   # (Bn, Cr)
        s = jnp.dot(h, w2t_ref[...], preferred_element_type=jnp.float32)
        s = jax.nn.sigmoid(s + b2_ref[...])                     # (Bn, C)
        s_ref[...] = s[:, :, None]                              # (Bn, C, 1)


def _ca_rescale_kernel(x_ref, s_ref, o_ref):
    """Two-pass path, pass 2: HW-tiled channel rescale."""
    x = x_ref[...]                                              # (Bn, C, Thw)
    s = s_ref[...].astype(x.dtype)                              # (Bn, C, 1)
    o_ref[...] = (x * s).astype(o_ref.dtype)


# ---------------------------------------------------------------------------
# Generation-aware sizing helpers
# ---------------------------------------------------------------------------

def _vmem_capacity_bytes():
    cap = 64 << 20      # conservative default: valid on v7x, v6e, v5e
    try:
        info = pltpu.get_tpu_info()
        cap = int(getattr(info, "vmem_capacity_bytes", cap))
    except Exception:
        pass
    return cap


def _has_multiple_tensorcores():
    try:
        info = pltpu.get_tpu_info()
        for attr in ("num_cores", "core_count", "num_tensorcores",
                     "tensorcore_count", "cores_per_chip"):
            v = getattr(info, attr, None)
            if v is not None:
                return int(v) > 1
    except Exception:
        pass
    try:
        kind = jax.devices()[0].device_kind.lower()
        return any(tag in kind for tag in ("v4", "v5p", "v7", "7x"))
    except Exception:
        return False


# ---------------------------------------------------------------------------
# Wrapper
# ---------------------------------------------------------------------------

def ca_layer(x, w1, b1, w2, b2, *, force_two_pass=False, hw_tile=None):
    """CALayer forward.

    x:  (N, C, H, W)  float32 or bfloat16
    w1: (C//r, C), b1: (C//r,)   -- first 1x1 conv (squeeze)
    w2: (C, C//r), b2: (C,)      -- second 1x1 conv (excite)
    Returns (N, C, H, W) in x's dtype.
    """
    N, C, H, W = x.shape
    Cr = w1.shape[0]
    HW = H * W
    itemsize = jnp.dtype(x.dtype).itemsize

    # Transpose so SE matmuls act on lane-dense (Bn, C) activations; fold the
    # 1/HW pooling scale into w1t.
    w1t = (jnp.transpose(w1) / float(HW)).astype(jnp.float32)   # (C, Cr)
    w2t = jnp.transpose(w2).astype(jnp.float32)                 # (Cr, C)
    b1r = b1.reshape(1, Cr).astype(jnp.float32)
    b2r = b2.reshape(1, C).astype(jnp.float32)
    weight_bytes = (2 * C * Cr + C + Cr) * 4

    # ---- generation-aware block budget -------------------------------------
    vmem_cap = _vmem_capacity_bytes()
    usable = max(vmem_cap - (12 << 20), 8 << 20)     # compiler/scratch headroom
    # in + out double-buffered (= 4x block) plus a possible full-block f32
    # temporary when pooling sub-f32 inputs.
    bufs = 4 + (2 if itemsize < 4 else 0)
    block_target = max(1 << 20, usable // bufs)
    headroom = 4 << 20

    bytes_per_image = C * HW * itemsize
    x3 = x.reshape(N, C, HW)
    multi_core = _has_multiple_tensorcores()

    if not force_two_pass and bytes_per_image <= block_target:
        # ---------------- fused single-pass path -----------------------------
        bn = max(1, min(N, block_target // bytes_per_image))
        if multi_core and N >= 2:
            # Keep >= 2 grid steps so both TensorCores get work (v7x/megacore).
            bn = min(bn, pl.cdiv(N, 2))
        grid_n = pl.cdiv(N, bn)        # partial last block is masked by Pallas

        need = bufs * bn * bytes_per_image + weight_bytes + headroom
        vmem_limit = int(min(max(need, 16 << 20), vmem_cap))

        out = pl.pallas_call(
            _ca_fused_kernel,
            out_shape=jax.ShapeDtypeStruct((N, C, HW), x.dtype),
            grid_spec=pltpu.PrefetchScalarGridSpec(
                num_scalar_prefetch=0,
                grid=(grid_n,),
                in_specs=[
                    pl.BlockSpec((bn, C, HW), lambda n: (n, 0, 0)),
                    pl.BlockSpec((C, Cr), lambda n: (0, 0)),
                    pl.BlockSpec((1, Cr), lambda n: (0, 0)),
                    pl.BlockSpec((Cr, C), lambda n: (0, 0)),
                    pl.BlockSpec((1, C), lambda n: (0, 0)),
                ],
                out_specs=pl.BlockSpec((bn, C, HW), lambda n: (n, 0, 0)),
            ),
            compiler_params=pltpu.CompilerParams(
                dimension_semantics=("parallel",),
                vmem_limit_bytes=vmem_limit,
            ),
        )(x3, w1t, b1r, w2t, b2r)
        return out.reshape(N, C, H, W)

    # -------------------- two-pass fallback path ------------------------------
    bn = 1
    thw = hw_tile if hw_tile is not None else block_target // (C * itemsize)
    if thw >= HW:
        thw = HW
    else:
        thw = max(128, (thw // 128) * 128)   # keep the lane tile 128-aligned
        thw = min(thw, HW)
    grid = (pl.cdiv(N, bn), pl.cdiv(HW, thw))
    tile_bytes = bn * C * thw * itemsize

    # Pass 1: pooled sums + squeeze-excite -> per-image scale (N, C, 1).
    pool_need = ((2 + (2 if itemsize < 4 else 0)) * tile_bytes
                 + 3 * bn * C * 4 + weight_bytes + headroom)
    pool_limit = int(min(max(pool_need, 16 << 20), vmem_cap))

    scale = pl.pallas_call(
        functools.partial(_ca_pool_se_kernel, HW, thw),
        out_shape=jax.ShapeDtypeStruct((N, C, 1), jnp.float32),
        grid_spec=pltpu.PrefetchScalarGridSpec(
            num_scalar_prefetch=0,
            grid=grid,
            in_specs=[
                pl.BlockSpec((bn, C, thw), lambda n, h: (n, 0, h)),
                pl.BlockSpec((C, Cr), lambda n, h: (0, 0)),
                pl.BlockSpec((1, Cr), lambda n, h: (0, 0)),
                pl.BlockSpec((Cr, C), lambda n, h: (0, 0)),
                pl.BlockSpec((1, C), lambda n, h: (0, 0)),
            ],
            out_specs=pl.BlockSpec((bn, C, 1), lambda n, h: (n, 0, 0)),
            scratch_shapes=[pltpu.VMEM((bn, C), jnp.float32)],
        ),
        compiler_params=pltpu.CompilerParams(
            dimension_semantics=("parallel", "arbitrary"),
            vmem_limit_bytes=pool_limit,
        ),
    )(x3, w1t, b1r, w2t, b2r)

    # Pass 2: HW-tiled rescale.
    rescale_need = 4 * tile_bytes + 2 * bn * C * 4 + headroom
    rescale_limit = int(min(max(rescale_need, 16 << 20), vmem_cap))

    out = pl.pallas_call(
        _ca_rescale_kernel,
        out_shape=jax.ShapeDtypeStruct((N, C, HW), x.dtype),
        grid_spec=pltpu.PrefetchScalarGridSpec(
            num_scalar_prefetch=0,
            grid=grid,
            in_specs=[
                pl.BlockSpec((bn, C, thw), lambda n, h: (n, 0, h)),
                pl.BlockSpec((bn, C, 1), lambda n, h: (n, 0, 0)),
            ],
            out_specs=pl.BlockSpec((bn, C, thw), lambda n, h: (n, 0, h)),
        ),
        compiler_params=pltpu.CompilerParams(
            dimension_semantics=("parallel", "parallel"),
            vmem_limit_bytes=rescale_limit,
        ),
    )(x3, scale)
    return out.reshape(N, C, H, W)


# ---------------------------------------------------------------------------
# Reference + checks
# ---------------------------------------------------------------------------

def ca_layer_ref(x, w1, b1, w2, b2):
    """Pure-JAX reference matching the PyTorch CALayer semantics."""
    pooled = jnp.mean(x, axis=(2, 3))                              # (N, C)
    h = jnp.maximum(pooled @ w1.T + b1, 0.0)                       # (N, C//r)
    s = jax.nn.sigmoid(h @ w2.T + b2)                              # (N, C)
    return x * s[:, :, None, None]


def _make_inputs(N, C, H, W, reduction, key, dtype=jnp.float32):
    Cr = max(1, C // reduction)
    kx, k1, k2, k3, k4 = jax.random.split(key, 5)
    x = jax.random.normal(kx, (N, C, H, W), dtype=jnp.float32).astype(dtype)
    # Conv2d(C, C//r, 1) weight (C//r, C, 1, 1) squeezed; bias (C//r,)
    w1 = jax.random.normal(k1, (Cr, C), dtype=jnp.float32) * 0.1
    b1 = jax.random.normal(k2, (Cr,), dtype=jnp.float32) * 0.1
    # Conv2d(C//r, C, 1) weight (C, C//r, 1, 1) squeezed; bias (C,)
    w2 = jax.random.normal(k3, (C, Cr), dtype=jnp.float32) * 0.1
    b2 = jax.random.normal(k4, (C,), dtype=jnp.float32) * 0.1
    return x, w1, b1, w2, b2


def _run_check(N, C, H, W, reduction, key, *, dtype=jnp.float32,
               force_two_pass=False, hw_tile=None, atol=1e-5, rtol=1e-5):
    x, w1, b1, w2, b2 = _make_inputs(N, C, H, W, reduction, key, dtype)
    out = jax.block_until_ready(
        ca_layer(x, w1, b1, w2, b2, force_two_pass=force_two_pass,
                 hw_tile=hw_tile))
    ref = ca_layer_ref(x.astype(jnp.float32), w1, b1, w2, b2)
    assert out.shape == (N, C, H, W)
    assert out.dtype == x.dtype
    assert jnp.allclose(out.astype(jnp.float32), ref, atol=atol, rtol=rtol), \
        "mismatch vs reference"


if __name__ == "__main__":
    key = jax.random.PRNGKey(0)
    k_a, k_b, k_c, k_d = jax.random.split(key, 4)

    # Module config: channel=32, reduction=16 -> hidden = 2.
    # Fused path, even batch.
    _run_check(N=2, C=32, H=16, W=16, reduction=16, key=k_a)
    # Fused path, awkward batch (exercises cdiv / partial last block).
    _run_check(N=5, C=32, H=16, W=16, reduction=16, key=k_b)
    # Fused path, bf16 inputs (halves HBM bytes on the bandwidth-bound op).
    _run_check(N=2, C=32, H=16, W=16, reduction=16, key=k_c,
               dtype=jnp.bfloat16, atol=5e-2, rtol=5e-2)
    # Two-pass fallback (forced small tile, non-128-multiple HW -> mask path).
    _run_check(N=3, C=32, H=16, W=12, reduction=16, key=k_d,
               force_two_pass=True, hw_tile=128)

    print("KERNEL_OK")
</pallas_src>

<mosaic_0001>
module attributes {stable_mosaic.version = 11 : i64} {
  func.func @_ca_fused_kernel(%arg0: i32, %arg1: memref<2x32x256xf32, #tpu.memory_space<vmem>>, %arg2: memref<32x2xf32, #tpu.memory_space<vmem>>, %arg3: memref<1x2xf32, #tpu.memory_space<vmem>>, %arg4: memref<2x32xf32, #tpu.memory_space<vmem>>, %arg5: memref<1x32xf32, #tpu.memory_space<vmem>>, %arg6: memref<2x32x256xf32, #tpu.memory_space<vmem>>) attributes {dimension_semantics = [#tpu.dimension_semantics<parallel>], iteration_bounds = array<i64: 1>, scalar_prefetch = 0 : i64, scratch_operands = 0 : i64, tpu.core_type = #tpu.core_type<tc>, window_params = [{transform_indices = @transform_0, window_bounds = array<i64: 2, 32, 256>}, {pipeline_mode = #tpu.pipeline_mode<synchronous>, transform_indices = @transform_1, window_bounds = array<i64: 32, 2>}, {pipeline_mode = #tpu.pipeline_mode<synchronous>, transform_indices = @transform_2, window_bounds = array<i64: 1, 2>}, {pipeline_mode = #tpu.pipeline_mode<synchronous>, transform_indices = @transform_3, window_bounds = array<i64: 2, 32>}, {pipeline_mode = #tpu.pipeline_mode<synchronous>, transform_indices = @transform_4, window_bounds = array<i64: 1, 32>}, {transform_indices = @transform_5, window_bounds = array<i64: 2, 32, 256>}]} {
    %c0 = arith.constant 0 : index
    %c0_0 = arith.constant 0 : index
    %c0_1 = arith.constant 0 : index
    %0 = vector.load %arg1[%c0, %c0_0, %c0_1] : memref<2x32x256xf32, #tpu.memory_space<vmem>>, vector<2x32x256xf32>
    %cst = arith.constant dense<0.000000e+00> : vector<2x32xf32>
    %1 = vector.multi_reduction <add>, %0, %cst [2] : vector<2x32x256xf32> to vector<2x32xf32>
    %c0_2 = arith.constant 0 : index
    %c0_3 = arith.constant 0 : index
    %2 = vector.load %arg2[%c0_2, %c0_3] : memref<32x2xf32, #tpu.memory_space<vmem>>, vector<32x2xf32>
    %cst_4 = arith.constant dense<0.000000e+00> : vector<2x2xf32>
    %3 = tpu.matmul %1, %2, %cst_4 {dimension_numbers = #tpu.dot_dimension_numbers<[1], [0], [0], [1], [0, 0, 1, 1], [], []>} : vector<2x32xf32>, vector<32x2xf32>, vector<2x2xf32> -> vector<2x2xf32>
    %c0_5 = arith.constant 0 : index
    %c0_6 = arith.constant 0 : index
    %4 = vector.load %arg3[%c0_5, %c0_6] : memref<1x2xf32, #tpu.memory_space<vmem>>, vector<1x2xf32>
    %5 = vector.broadcast %4 : vector<1x2xf32> to vector<2x2xf32>
    %6 = arith.addf %3, %5 : vector<2x2xf32>
    %cst_7 = arith.constant 0.000000e+00 : f32
    %7 = vector.broadcast %cst_7 : f32 to vector<2x2xf32>
    %8 = arith.maximumf %6, %7 : vector<2x2xf32>
    %c0_8 = arith.constant 0 : index
    %c0_9 = arith.constant 0 : index
    %9 = vector.load %arg4[%c0_8, %c0_9] : memref<2x32xf32, #tpu.memory_space<vmem>>, vector<2x32xf32>
    %cst_10 = arith.constant dense<0.000000e+00> : vector<2x32xf32>
    %10 = tpu.matmul %8, %9, %cst_10 {dimension_numbers = #tpu.dot_dimension_numbers<[1], [0], [0], [1], [0, 0, 1, 1], [], []>} : vector<2x2xf32>, vector<2x32xf32>, vector<2x32xf32> -> vector<2x32xf32>
    %c0_11 = arith.constant 0 : index
    %c0_12 = arith.constant 0 : index
    %11 = vector.load %arg5[%c0_11, %c0_12] : memref<1x32xf32, #tpu.memory_space<vmem>>, vector<1x32xf32>
    %12 = vector.broadcast %11 : vector<1x32xf32> to vector<2x32xf32>
    %13 = arith.addf %10, %12 : vector<2x32xf32>
    %14 = arith.negf %13 : vector<2x32xf32>
    %15 = math.exp %14 : vector<2x32xf32>
    %cst_13 = arith.constant 1.000000e+00 : f32
    %16 = vector.broadcast %cst_13 : f32 to vector<2x32xf32>
    %17 = arith.addf %16, %15 : vector<2x32xf32>
    %18 = arith.divf %16, %17 : vector<2x32xf32>
    %19 = vector.shape_cast %18 : vector<2x32xf32> to vector<2x32x1xf32>
    %20 = vector.broadcast %19 : vector<2x32x1xf32> to vector<2x32x256xf32>
    %21 = arith.mulf %0, %20 : vector<2x32x256xf32>
    %c0_14 = arith.constant 0 : index
    %c0_15 = arith.constant 0 : index
    %c0_16 = arith.constant 0 : index
    %22 = vector.load %arg6[%c0_14, %c0_15, %c0_16] : memref<2x32x256xf32, #tpu.memory_space<vmem>>, vector<2x32x256xf32>
    tpu.vector_store %arg6[%c0_14, %c0_15, %c0_16], %21 {strides = array<i32>} : memref<2x32x256xf32, #tpu.memory_space<vmem>>, vector<2x32x256xf32>,
    return
  }
  func.func @transform_0(%arg0: i32) -> (i32, i32, i32) {
    %c0_i32 = arith.constant 0 : i32
    %c0_i32_0 = arith.constant 0 : i32
    %c0_i32_1 = arith.constant 0 : i32
    return %arg0, %c0_i32, %c0_i32_0 : i32, i32, i32
  }
  func.func @transform_1(%arg0: i32) -> (i32, i32) {
    %c0_i32 = arith.constant 0 : i32
    %c0_i32_0 = arith.constant 0 : i32
    %c0_i32_1 = arith.constant 0 : i32
    return %c0_i32, %c0_i32_0 : i32, i32
  }
  func.func @transform_2(%arg0: i32) -> (i32, i32) {
    %c0_i32 = arith.constant 0 : i32
    %c0_i32_0 = arith.constant 0 : i32
    %c0_i32_1 = arith.constant 0 : i32
    return %c0_i32, %c0_i32_0 : i32, i32
  }
  func.func @transform_3(%arg0: i32) -> (i32, i32) {
    %c0_i32 = arith.constant 0 : i32
    %c0_i32_0 = arith.constant 0 : i32
    %c0_i32_1 = arith.constant 0 : i32
    return %c0_i32, %c0_i32_0 : i32, i32
  }
  func.func @transform_4(%arg0: i32) -> (i32, i32) {
    %c0_i32 = arith.constant 0 : i32
    %c0_i32_0 = arith.constant 0 : i32
    %c0_i32_1 = arith.constant 0 : i32
    return %c0_i32, %c0_i32_0 : i32, i32
  }
  func.func @transform_5(%arg0: i32) -> (i32, i32, i32) {
    %c0_i32 = arith.constant 0 : i32
    %c0_i32_0 = arith.constant 0 : i32
    %c0_i32_1 = arith.constant 0 : i32
    return %arg0, %c0_i32, %c0_i32_0 : i32, i32, i32
  }
}

</mosaic_0001>

<bundles_post_ra>
// kernel: tpu_custom_call.1
= control target key start
LH: loop header
LB: loop body
LE: loop exit
PB: predicated region body
PF: predicated region fallthrough
CT: control target
= control target key end

     0   :  { %10 = vsyncpa [#allocation3], 0  ;;  %s500_s0 = inlined_call_operand.hbm [shape: f32[2,32,256], index: 0, kind: input, shape index: {}]   ;;  %s501_s1 = inlined_call_operand.vmem [shape: f32[32,2], index: 1, kind: input, shape index: {}]   ;;  %s502_s2 = inlined_call_operand.vmem [shape: f32[1,2], index: 2, kind: input, shape index: {}]   ;;  %s503_s3 = inlined_call_operand.vmem [shape: f32[2,32], index: 3, kind: input, shape index: {}]   ;;  %s504_s4 = inlined_call_operand.vmem [shape: f32[1,32], index: 4, kind: input, shape index: {}]   ;;  %s505_s5 = inlined_call_operand.hbm [shape: f32[2,32,256], index: 5, kind: output, shape index: {}]  }
   0x1   :  { %11 = vsyncpa [#allocation4], 0  ;;  %s16_s20 = sshll.u32 %s500_s0, 4  ;;  %s369_s21 = smov [#allocation2]   ;;  %s17_s20 = int_to_ptr.hbm [resolvable:$true] %s16_s20 }
   0x2   :  { %s18_s22 = sshll.u32 %s369_s21, 4  ;;  %s370_s23 = smov 256   ;;  %s19_s22 = int_to_ptr.vmem [resolvable:$true] %s18_s22 }
   0x3   :  { %s371_s24 = smov 16  }
   0x4   :  { %24 = dma.hbm_to_vmem [thread:$0]  %s17_s20, 2048, %s19_s22, [#allocation3], %s370_s23, %s370_s23, %s371_s24  }
   0x5   :  { %365 = dma.done.wait [#allocation3], 2048  }
   0x6   :  { %366 = vsyncadd [#allocation3], 4294965248  ;;  %v409_v0 = vld [vmem:[#allocation2 + $0x40] sm:$0xff]  ;;  %v411_v1 = vld [vmem:[#allocation2 + $0x48] sm:$0xff]  ;;  %v93_v29 = vlaneseq  ;;  %vm98_vm0 = vcmask 130112   ;;  %vm102_vm1 = vcmask 195712  }
   0x7   :  { %v413_v2 = vld [vmem:[#allocation2] sm:$0xff]  ;;  %v65_v3 = vadd.f32 %v411_v1, %v409_v0  ;;  %v417_v4 = vld [vmem:[#allocation2 + $0x8] sm:$0xff]  ;;  %v427_v9 = vld [vmem:[#allocation2 + $0x50] sm:$0xff]  ;;  %vm106_vm2 = vcmask 261312   ;;  %vm115_vm3 = vcmask 1041409   ;;  %vm117_vm4 = vcmask 261120  }
   0x8   :  { %v419_v5 = vld [vmem:[#allocation2 + $0x20] sm:$0xff]  ;;  %v421_v6 = vld [vmem:[#allocation2 + $0x28] sm:$0xff]  ;;  %v53_v7 = vadd.f32 %v417_v4, %v413_v2  ;;  %v429_v10 = vld [vmem:[#allocation2 + $0x58] sm:$0xff]  ;;  %v94_v32 = vand.u32 127, %v93_v29  ;;  %vm150_vm5 = vcmask 1041408   ;;  %vm146_vm6 = vcmask 15360  }
   0x9   :  { %v59_v8 = vadd.f32 %v421_v6, %v419_v5  ;;  %66 = vadd.xlane.f32.xlu1 %v65_v3  ;;  %v431_v11 = vld [vmem:[#allocation2 + $0x10] sm:$0xff]  ;;  %v433_v12 = vld [vmem:[#allocation2 + $0x18] sm:$0xff]  ;;  %v435_v13 = vld [vmem:[#allocation2 + $0x60] sm:$0xff]  ;;  %v68_v15 = vadd.f32 %v429_v10, %v427_v9  ;;  %v195_v61 = vshrl.u32 %v93_v29, 7  ;;  %s281_s13 = sshll.u32 %s505_s5, 4  ;;  %s282_s13 = int_to_ptr.hbm [resolvable:$true] %s281_s13 }
   0xa   :  { %54 = vadd.xlane.f32.xlu0 %v53_v7  ;;  %v437_v14 = vld [vmem:[#allocation2 + $0x68] sm:$0xff]  ;;  %v56_v16 = vadd.f32 %v433_v12, %v431_v11  ;;  %v445_v18 = vld [vmem:[#allocation2 + $0x70] sm:$0xff]  ;;  %v447_v19 = vld [vmem:[#allocation2 + $0x78] sm:$0xff]  ;;  %v96_v33 = vadd.s32 4294967288, %v94_v32  ;;  %v100_v38 = vadd.s32 4294967280, %v94_v32  ;;  %v104_v41 = vadd.s32 4294967272, %v94_v32 }
   0xb   :  { %60 = vadd.xlane.f32.xlu2 %v59_v8  ;;  %v71_v17 = vadd.f32 %v437_v14, %v435_v13  ;;  %v449_v20 = vld [vmem:[#allocation2 + $0x30] sm:$0xff]  ;;  %v451_v21 = vld [vmem:[#allocation2 + $0x38] sm:$0xff]  ;;  %v74_v22 = vadd.f32 %v447_v19, %v445_v18  ;;  %v78_v26 = vld [vmem:[%s501_s1 + $0x8] sm:$0xff]  ;;  %v208_v62 = vadd.s32 16, %v195_v61  ;;  %v202_v63 = vadd.s32 8, %v195_v61 }
   0xc   :  { %v62_v23 = vadd.f32 %v451_v21, %v449_v20  ;;  %v80_v24 = vld [vmem:[%s501_s1 + $0x18] sm:$0xff]  ;;  %v79_v25 = vld [vmem:[%s501_s1 + $0x10] sm:$0xff]  ;;  %v77_v27 = vld [vmem:[%s501_s1] sm:$0xff]  ;;  %302 = vset.pattern.permute.xlu2 %v195_v61 }
   0xd   :  { %132 = vmatpush.msra.mxu0 %v80_v24  ;;  %v141_v56 = vld [vmem:[%s503_s3] sm:$0x3]  ;;  %304 = vset.pattern.permute.xlu1 %v208_v62 }
   0xe   :  { %295 = vmatpush.msk.msra.mxu1 %vm150_vm5, %v141_v56  ;;  %v311_v57 = vld [vmem:[%s502_s2] ss:$0 sm:$0xff]  ;;  %303 = vset.pattern.permute.xlu0 %v202_v63  ;;  %s372_s2 = smov [#allocation5]  }
   0xf   :  { %133 = vmatpush.msra.mxu0 %v79_v25  ;;  %v312_v3 = vld [vmem:[%s504_s4] ss:$0 sm:$0xff]  ;;  %s279_s3 = sshll.u32 %s372_s2, 4  ;;  %s280_s3 = int_to_ptr.vmem [resolvable:$true] %s279_s3 }
  0x11   :  { %69 = vadd.xlane.f32.xlu1 %v68_v15  ;;  %134 = vmatpush.msra.mxu0 %v78_v26 }
  0x12   :  { %57 = vadd.xlane.f32.xlu0 %v56_v16 }
  0x13   :  { %72 = vadd.xlane.f32.xlu2 %v71_v17  ;;  %135 = vmatpush.msra.mxu0 %v77_v27 }
  0x19   :  { %75 = vadd.xlane.f32.xlu1 %v74_v22 }
  0x1a   :  { %63 = vadd.xlane.f32.xlu0 %v62_v23 }
  0x7c   :  { %v67_v28 = vpop.xlane.xlu1 %66 }
  0x7d   :  { %v55_v30 = vpop.xlane.xlu0 %54  ;;  %v108_v40 = vperm.slane %v67_v28, %v94_v32 }
  0x7e   :  { %v61_v31 = vpop.xlane.xlu2 %60  ;;  %v95_v42 = vperm.slane %v55_v30, %v94_v32 }
  0x7f   :  { %v101_v47 = vperm.slane %v61_v31, %v100_v38 }
  0x84   :  { %v70_v34 = vpop.xlane.xlu1 %69 }
  0x85   :  { %v58_v35 = vpop.xlane.xlu0 %57  ;;  %v109_v36 = vperm.slane %v70_v34, %v96_v33 }
  0x86   :  { %v73_v37 = vpop.xlane.xlu2 %72  ;;  %v97_v39 = vperm.slane %v58_v35, %v96_v33  ;;  %v214_v33 = vadd.s32 24, %v195_v61 }
  0x87   :  { %v111_v43 = vperm.slane %v73_v37, %v100_v38  ;;  %v110_v44 = vsel %vm98_vm0, %v109_v36, %v108_v40 }
  0x88   :  { %v99_v45 = vsel %vm98_vm0, %v97_v39, %v95_v42 }
  0x89   :  { %v112_v50 = vsel %vm102_vm1, %v111_v43, %v110_v44  ;;  %v103_v52 = vsel %vm102_vm1, %v101_v47, %v99_v45 }
  0x8c   :  { %v76_v46 = vpop.xlane.xlu1 %75 }
  0x8d   :  { %v113_v48 = vperm.slane %v76_v46, %v104_v41  ;;  %v64_v49 = vpop.xlane.xlu0 %63 }
  0x8e   :  { %v105_v51 = vperm.slane %v64_v49, %v104_v41 }
  0x8f   :  { %v114_v53 = vsel %vm106_vm2, %v113_v48, %v112_v50 }
  0x90   :  { %v107_v54 = vsel %vm106_vm2, %v105_v51, %v103_v52 }
  0x91   :  { %v116_v55 = vsel %vm115_vm3, %v114_v53, %v107_v54 }
  0x92   :  { %294 = vmatmul.msk.f32.vlgmr.msra.gmra.mxu0 %vm117_vm4, %v116_v55 }
 0x10f   :  { %v137_v58 = vpop.f32.mrf.mxu0 }
 0x110   :  { %v138_v59 = vadd.f32 %v311_v57, %v137_v58 }
 0x112   :  { %v140_v60 = vmax.f32 %v138_v59, 0.0 }
 0x114   :  { %296 = vmatmul.msk.f32.vlgmr.msra.gmra.mxu1 %vm146_vm6, %v140_v60 }
 0x191   :  { %v171_v7 = vpop.f32.mrf.mxu1 }
 0x192   :  { %v172_v8 = vadd.f32 %v312_v3, %v171_v7 }
 0x194   :  { %v297_v15 = vmul.f32 -1.442695, %v172_v8 }
 0x196   :  { %313 = vpow2.f32 %v297_v15 }
 0x19c   :  { %v314_v16 = vpop.eup %313 }
 0x19d   :  { %v177_v17 = vadd.f32 1.0, %v314_v16 }
 0x19f   :  { %315 = vrcp.f32 %v177_v17  ;;  %v189_v25 = vand.u32 2147483648, %v177_v17  ;;  %v187_v27 = vand.u32 2147483647, %v177_v17  ;;  %vm183_vm8 = vweird.f32 %v177_v17 }
 0x1a1   :  { %v190_v29 = vor.u32 1.1754944e-38, %v189_v25  ;;  %vm188_vm10 = vcmp.eq.f32.partialorder %v187_v27, 8.507059e+37 }
 0x1a5   :  { %v316_v22 = vpop.eup %315 }
 0x1a6   :  { %v179_v23 = vmul.f32 %v316_v22, %v177_v17  ;;  %vm184_vm7 = vweird.f32 %v316_v22 }
 0x1a7   :  { %vm185_vm9 = vmor %vm183_vm8, %vm184_vm7 }
 0x1a8   :  { %v180_v24 = vsub.f32 1.0, %v179_v23 }
 0x1aa   :  { %v181_v26 = vmul.f32 %v316_v22, %v180_v24 }
 0x1ac   :  { %v182_v28 = vadd.f32 %v316_v22, %v181_v26 }
 0x1ae   :  { %v186_v30 = vsel %vm185_vm9, %v316_v22, %v182_v28 }
 0x1af   :  { %v191_v31 = vsel %vm188_vm10, %v190_v29, %v186_v30 }
 0x1b0   :  { %v193_v32 = vperm.slane %v191_v31, 0  ;;  %v218_v34 = vperm.slane %v191_v31, 1 }
 0x1b2   :  { %210 = vperm.xlu1 %304, %v193_v32   ;;  %204 = vperm.xlu0 %303, %v193_v32  }
 0x1b3   :  { %198 = vperm.xlu2 %302, %v193_v32  }
 0x1ba   :  { %307 = vset.pattern.permute.xlu1 %v202_v63  ;;  %310 = vset.pattern.permute.xlu0 %v214_v33 }
 0x1bb   :  { %305 = vset.pattern.permute.xlu2 %v214_v33 }
 0x1c2   :  { %229 = vperm.xlu1 %307, %v218_v34  }
 0x1c3   :  { %216 = vperm.xlu2 %305, %v193_v32  }
 0x1ca   :  { %309 = vset.pattern.permute.xlu1 %v214_v33 }
 0x1cb   :  { %306 = vset.pattern.permute.xlu2 %v195_v61 }
 0x1d2   :  { %241 = vperm.xlu1 %309, %v218_v34  }
 0x1d3   :  { %223 = vperm.xlu2 %306, %v218_v34  }
 0x1db   :  { %308 = vset.pattern.permute.xlu2 %v208_v62 }
 0x1e3   :  { %235 = vperm.xlu2 %308, %v218_v34  }
 0x20d   :  { %v199_v35 = vpop.permute.xlu2 %198 }
 0x20e   :  { %v243_v36 = vmul.f32 %v199_v35, %v413_v2  ;;  %v244_v37 = vmul.f32 %v199_v35, %v417_v4 }
 0x210   :  { %259 = vst [vmem:[#allocation5] sm:$0xff] %v243_v36 }
 0x211   :  { %260 = vst [vmem:[#allocation5 + $0x8] sm:$0xff] %v244_v37 }
 0x21d   :  { %v217_v38 = vpop.permute.xlu2 %216 }
 0x21e   :  { %v249_v39 = vmul.f32 %v217_v38, %v449_v20  ;;  %v250_v40 = vmul.f32 %v217_v38, %v451_v21 }
 0x220   :  { %265 = vst [vmem:[#allocation5 + $0x30] sm:$0xff] %v249_v39 }
 0x221   :  { %266 = vst [vmem:[#allocation5 + $0x38] sm:$0xff] %v250_v40 }
 0x224   :  { %v211_v41 = vpop.permute.xlu1 %210  ;;  %v205_v42 = vpop.permute.xlu0 %204 }
 0x225   :  { %v247_v43 = vmul.f32 %v211_v41, %v419_v5  ;;  %v248_v44 = vmul.f32 %v211_v41, %v421_v6  ;;  %v245_v45 = vmul.f32 %v205_v42, %v431_v11  ;;  %v246_v2 = vmul.f32 %v205_v42, %v433_v12 }
 0x227   :  { %263 = vst [vmem:[#allocation5 + $0x20] sm:$0xff] %v247_v43 }
 0x228   :  { %264 = vst [vmem:[#allocation5 + $0x28] sm:$0xff] %v248_v44 }
 0x229   :  { %261 = vst [vmem:[#allocation5 + $0x10] sm:$0xff] %v245_v45 }
 0x22a   :  { %262 = vst [vmem:[#allocation5 + $0x18] sm:$0xff] %v246_v2 }
 0x22d   :  { %v224_v4 = vpop.permute.xlu2 %223 }
 0x22e   :  { %v251_v20 = vmul.f32 %v224_v4, %v409_v0  ;;  %v252_v21 = vmul.f32 %v224_v4, %v411_v1 }
 0x230   :  { %267 = vst [vmem:[#allocation5 + $0x40] sm:$0xff] %v251_v20 }
 0x231   :  { %268 = vst [vmem:[#allocation5 + $0x48] sm:$0xff] %v252_v21 }
 0x234   :  { %v230_v46 = vpop.permute.xlu1 %229 }
 0x235   :  { %v253_v5 = vmul.f32 %v230_v46, %v427_v9  ;;  %v254_v6 = vmul.f32 %v230_v46, %v429_v10 }
 0x237   :  { %269 = vst [vmem:[#allocation5 + $0x50] sm:$0xff] %v253_v5 }
 0x238   :  { %270 = vst [vmem:[#allocation5 + $0x58] sm:$0xff] %v254_v6 }
 0x23d   :  { %v236_v11 = vpop.permute.xlu2 %235 }
 0x23e   :  { %v255_v12 = vmul.f32 %v236_v11, %v435_v13  ;;  %v256_v47 = vmul.f32 %v236_v11, %v437_v14 }
 0x240   :  { %271 = vst [vmem:[#allocation5 + $0x60] sm:$0xff] %v255_v12 }
 0x241   :  { %272 = vst [vmem:[#allocation5 + $0x68] sm:$0xff] %v256_v47 }
 0x244   :  { %v242_v0 = vpop.permute.xlu1 %241 }
 0x245   :  { %v257_v1 = vmul.f32 %v242_v0, %v445_v18  ;;  %v258_v9 = vmul.f32 %v242_v0, %v447_v19 }
 0x247   :  { %273 = vst [vmem:[#allocation5 + $0x70] sm:$0xff] %v257_v1 }
 0x248   :  { %274 = vst [vmem:[#allocation5 + $0x78] sm:$0xff] %v258_v9 }
 0x249   :  { %287 = dma.vmem_to_hbm [thread:$0]  %s280_s3, 2048, %s282_s13, [#allocation4], %s370_s23, %s370_s23, %s371_s24  }
 0x24a   :  { %367 = dma.done.wait [#allocation4], 2048  }
 0x24b   :  { %368 = vsyncadd [#allocation4], 4294965248 }
 0x24c   :  { %292 = vsyncpa [#allocation3], 1 }
 0x24d   :  { %293 = vsyncpa [#allocation4], 1 }

</bundles_post_ra>
